<compile_context>
chip_gen: v7x
topology: tpu7x:2x2x1
jax: 0.10.0
libtpu: 0.0.40
codegen_flags: <defaults>
</compile_context>

<pallas_src>
import math
import functools

import jax
import jax.numpy as jnp
from jax.experimental import pallas as pl
from jax.experimental.pallas import tpu as pltpu

VMEM_LIMIT = 48 * 1024 * 1024   # scoped VMEM budget; < v7x's 64 MiB physical


# ------------------------------ tiling helpers -------------------------------

def _round_up(x, m):
    return ((x + m - 1) // m) * m


def _tile(dim, preferred, quantum):
    """Largest tile <= preferred that divides `dim` and is a multiple of
    `quantum`; falls back to the full dim (always legal for TPU BlockSpecs)."""
    if dim <= preferred:
        return dim
    t = (min(preferred, dim) // quantum) * quantum
    while t >= quantum:
        if dim % t == 0:
            return t
        t -= quantum
    return dim


# --------------------- fused linear (+bias/relu/res/LN) ----------------------

def _linear_kernel(*refs, activation, fuse_residual, fuse_ln, ln_eps):
    idx = 0
    x_ref = refs[idx]; idx += 1
    w_ref = refs[idx]; idx += 1
    b_ref = refs[idx]; idx += 1
    res_ref = None
    if fuse_residual:
        res_ref = refs[idx]; idx += 1
    g_ref = bt_ref = None
    if fuse_ln:
        g_ref = refs[idx]; idx += 1
        bt_ref = refs[idx]; idx += 1
    o_ref = refs[idx]; idx += 1
    acc_ref = refs[idx]

    k = pl.program_id(2)

    @pl.when(k == 0)
    def _():
        acc_ref[...] = jnp.zeros_like(acc_ref)

    # bf16 MXU inputs, f32 accumulation.
    acc_ref[...] += jnp.dot(x_ref[...].astype(jnp.bfloat16),
                            w_ref[...].astype(jnp.bfloat16),
                            preferred_element_type=jnp.float32)

    @pl.when(k == pl.num_programs(2) - 1)
    def _():
        y = acc_ref[...] + b_ref[...].astype(jnp.float32)
        if activation == "relu":
            y = jnp.maximum(y, 0.0)
        if fuse_residual:
            y = y + res_ref[...].astype(jnp.float32)
        if fuse_ln:
            mean = jnp.mean(y, axis=-1, keepdims=True)
            yc = y - mean
            var = jnp.mean(yc * yc, axis=-1, keepdims=True)
            y = yc * jax.lax.rsqrt(var + ln_eps) * g_ref[...] + bt_ref[...]
        o_ref[...] = y.astype(o_ref.dtype)


def fused_linear(x2d, w, b, *, activation=None, residual=None, ln=None,
                 ln_eps=1e-5, out_dtype=None, tm=None, tn=256, tk=512):
    """y = act(x @ w + b) [+ residual] [-> LayerNorm].  x2d: (N,K), w: (K,Dout)."""
    N, K = x2d.shape
    Dout = w.shape[1]
    out_dtype = out_dtype if out_dtype is not None else x2d.dtype

    if ln is not None:
        # LayerNorm reduces over the full feature dim -> tn = Dout; keep the
        # resident set small (v7x 64 MiB VMEM) with smaller tm/tk.
        tn_eff = Dout
        tm_pref = 128 if tm is None else tm
        tk_pref = 256
    else:
        tn_eff = _tile(Dout, tn, 128)
        tm_pref = 256 if tm is None else tm
        tk_pref = tk

    # Pad rows to a clean tile multiple (16 covers bf16 sublane packing too).
    tm_eff = min(tm_pref, _round_up(N, 16))
    Np = _round_up(N, tm_eff)
    if Np != N:
        x2d = jnp.pad(x2d, ((0, Np - N), (0, 0)))
        if residual is not None:
            residual = jnp.pad(residual, ((0, Np - N), (0, 0)))
    tk_eff = _tile(K, tk_pref, 128)

    grid = (Np // tm_eff, Dout // tn_eff, K // tk_eff)

    in_specs = [
        pl.BlockSpec((tm_eff, tk_eff), lambda i, j, k: (i, k)),
        pl.BlockSpec((tk_eff, tn_eff), lambda i, j, k: (k, j)),
        pl.BlockSpec((1, tn_eff), lambda i, j, k: (0, j)),
    ]
    args = [x2d, w, b.reshape(1, Dout)]
    if residual is not None:
        in_specs.append(pl.BlockSpec((tm_eff, tn_eff), lambda i, j, k: (i, j)))
        args.append(residual)
    if ln is not None:
        gamma, beta = ln
        in_specs.append(pl.BlockSpec((1, tn_eff), lambda i, j, k: (0, j)))
        in_specs.append(pl.BlockSpec((1, tn_eff), lambda i, j, k: (0, j)))
        args.extend([gamma.reshape(1, Dout), beta.reshape(1, Dout)])

    n_extra = (Np * Dout if residual is not None else 0)
    cost = pl.CostEstimate(
        flops=2 * Np * K * Dout,
        transcendentals=0,
        bytes_accessed=int(Np * K * x2d.dtype.itemsize + K * Dout * w.dtype.itemsize
                           + 2 * Np * Dout * 4 + 4 * n_extra))

    out = pl.pallas_call(
        functools.partial(_linear_kernel, activation=activation,
                          fuse_residual=residual is not None,
                          fuse_ln=ln is not None, ln_eps=ln_eps),
        grid=grid,
        in_specs=in_specs,
        out_specs=pl.BlockSpec((tm_eff, tn_eff), lambda i, j, k: (i, j)),
        out_shape=jax.ShapeDtypeStruct((Np, Dout), out_dtype),
        scratch_shapes=[pltpu.VMEM((tm_eff, tn_eff), jnp.float32)],
        compiler_params=pltpu.CompilerParams(
            dimension_semantics=("parallel", "parallel", "arbitrary"),
            vmem_limit_bytes=VMEM_LIMIT),
        cost_estimate=cost,
    )(*args)
    return out[:N] if Np != N else out


# -------------------------- multi-head attention ------------------------------

def _attn_kernel(*refs, num_heads, scale, causal, q_in_packed, mask_q, mask_k):
    idx = 0
    q_ref = None
    if not q_in_packed:
        q_ref = refs[idx]; idx += 1
    kv_ref = refs[idx]; idx += 1          # (1, Sk, W*D) packed [q|]k|v, bf16
    qm_ref = km_ref = None
    if mask_q:
        qm_ref = refs[idx]; idx += 1      # (1, Sq, 1) f32
    if mask_k:
        km_ref = refs[idx]; idx += 1      # (1, 1, Sk) f32
    o_ref = refs[idx]                     # (1, tq, D)

    H = num_heads
    tq = o_ref.shape[1]
    D = o_ref.shape[2]
    Sk = kv_ref.shape[1]
    dh = D // H
    q_start = pl.multiple_of(pl.program_id(1) * tq, tq)

    if q_in_packed:
        q = kv_ref[0, pl.ds(q_start, tq), pl.ds(0, D)]          # (tq, D)
        k_off = D
    else:
        q = q_ref[0]                                            # (tq, D)
        k_off = 0
    k = kv_ref[0, :, pl.ds(k_off, D)]                           # (Sk, D)
    v = kv_ref[0, :, pl.ds(k_off + D, D)]                       # (Sk, D)

    # Batched-head score matmuls (leading head batch dim, bf16 MXU inputs).
    qh = jnp.transpose(q.reshape(tq, H, dh), (1, 0, 2))         # (H, tq, dh)
    kh = jnp.transpose(k.reshape(Sk, H, dh), (1, 0, 2))         # (H, Sk, dh)
    vh = jnp.transpose(v.reshape(Sk, H, dh), (1, 0, 2))         # (H, Sk, dh)
    s = jnp.einsum("hqd,hkd->hqk", qh, kh,
                   preferred_element_type=jnp.float32) * scale  # (H, tq, Sk) f32

    neg = jnp.float32(-1e30)
    if mask_q:
        qvalid = qm_ref[0, pl.ds(q_start, tq)] > 0.0            # (tq, 1)
        s = jnp.where(qvalid[None, :, :], s, neg)
    if mask_k:
        kvalid = km_ref[0] > 0.0                                # (1, Sk)
        s = jnp.where(kvalid[None, :, :], s, neg)
    if causal:
        q_idx = q_start + jax.lax.broadcasted_iota(jnp.int32, (tq, Sk), 0)
        k_idx = jax.lax.broadcasted_iota(jnp.int32, (tq, Sk), 1)
        s = jnp.where((k_idx <= q_idx)[None, :, :], s, neg)

    m = jnp.max(s, axis=-1, keepdims=True)
    e = jnp.exp(s - m)
    denom = jnp.sum(e, axis=-1, keepdims=True)
    p = (e * pl.reciprocal(denom, approx=True)).astype(vh.dtype)
    o = jnp.einsum("hqk,hkd->hqd", p, vh,
                   preferred_element_type=jnp.float32)          # (H, tq, dh)
    o_ref[0] = jnp.transpose(o, (1, 0, 2)).reshape(tq, D).astype(o_ref.dtype)


def attention(kv_packed, *, q=None, q_pad=None, k_pad=None, num_heads, causal=False,
              tq=128):
    """kv_packed: (B,Sk,3D) [q|k|v] (self-attn, q=None) or (B,Sk,2D) [k|v] (q given).
       q: (B,Sq,D) bf16 or None.  q_pad: (B,Sq,1) f32 or None.  k_pad: (B,1,Sk) f32 or None."""
    B, Sk, WD = kv_packed.shape
    q_in_packed = q is None
    W = 3 if q_in_packed else 2
    D = WD // W
    Sq = Sk if q_in_packed else q.shape[1]
    dh = D // num_heads
    scale = 1.0 / math.sqrt(dh)
    tq = _tile(Sq, tq, 16)
    grid = (B, Sq // tq)
    # TODO(synk): for long Sk convert to flash-style online-softmax over KV tiles
    # instead of keeping the full (Sk, W*D) block resident (v7x VMEM).

    in_specs, args = [], []
    if not q_in_packed:
        in_specs.append(pl.BlockSpec((1, tq, D), lambda b, i: (b, i, 0)))
        args.append(q)
    in_specs.append(pl.BlockSpec((1, Sk, WD), lambda b, i: (b, 0, 0)))
    args.append(kv_packed)
    if q_pad is not None:
        in_specs.append(pl.BlockSpec((1, Sq, 1), lambda b, i: (b, 0, 0)))
        args.append(q_pad)
    if k_pad is not None:
        in_specs.append(pl.BlockSpec((1, 1, Sk), lambda b, i: (b, 0, 0)))
        args.append(k_pad)

    cost = pl.CostEstimate(
        flops=4 * B * num_heads * Sq * Sk * dh,
        transcendentals=B * num_heads * Sq * Sk,
        bytes_accessed=int(2 * (B * Sq * D + B * Sk * WD)))

    return pl.pallas_call(
        functools.partial(_attn_kernel, num_heads=num_heads, scale=scale,
                          causal=causal, q_in_packed=q_in_packed,
                          mask_q=q_pad is not None, mask_k=k_pad is not None),
        grid=grid,
        in_specs=in_specs,
        out_specs=pl.BlockSpec((1, tq, D), lambda b, i: (b, i, 0)),
        out_shape=jax.ShapeDtypeStruct((B, Sq, D), jnp.bfloat16),
        compiler_params=pltpu.CompilerParams(
            dimension_semantics=("parallel", "parallel"),
            vmem_limit_bytes=VMEM_LIMIT),
        cost_estimate=cost,
    )(*args)


# -------------------------- standalone LayerNorm ------------------------------

def _ln_kernel(x_ref, g_ref, b_ref, o_ref, *, eps):
    x = x_ref[...].astype(jnp.float32)
    mean = jnp.mean(x, axis=-1, keepdims=True)
    xc = x - mean
    var = jnp.mean(xc * xc, axis=-1, keepdims=True)
    o_ref[...] = (xc * jax.lax.rsqrt(var + eps) * g_ref[...]
                  + b_ref[...]).astype(o_ref.dtype)


def layernorm(x2d, gamma, beta, eps=1e-5, tm=256):
    N, D = x2d.shape
    tm = _tile(N, tm, 8)
    return pl.pallas_call(
        functools.partial(_ln_kernel, eps=eps),
        grid=(N // tm,),
        in_specs=[pl.BlockSpec((tm, D), lambda i: (i, 0)),
                  pl.BlockSpec((1, D), lambda i: (0, 0)),
                  pl.BlockSpec((1, D), lambda i: (0, 0))],
        out_specs=pl.BlockSpec((tm, D), lambda i: (i, 0)),
        out_shape=jax.ShapeDtypeStruct((N, D), x2d.dtype),
        compiler_params=pltpu.CompilerParams(dimension_semantics=("parallel",),
                                             vmem_limit_bytes=VMEM_LIMIT),
    )(x2d, gamma.reshape(1, D), beta.reshape(1, D))


# ------------------------- model composition (glue) ---------------------------

def decoder_layer(x2d, mem2d, B, S, Sm, self_qpad, self_kpad, self_causal,
                  mem_kpad, lp, H):
    D = x2d.shape[1]

    # --- self attention: fused QKV projection -> packed bf16 (B,S,3D), no split ---
    qkv = fused_linear(x2d, lp["self_wqkv"], lp["self_bqkv"], out_dtype=jnp.bfloat16)
    ctx = attention(qkv.reshape(B, S, 3 * D), q_pad=self_qpad, k_pad=self_kpad,
                    num_heads=H, causal=self_causal)
    x2d = fused_linear(ctx.reshape(B * S, D), lp["self_wo"], lp["self_bo"],
                       residual=x2d, ln=(lp["ln1_g"], lp["ln1_b"]),
                       out_dtype=jnp.float32)

    # --- cross attention: fused K|V projection of memory (packed bf16) ---
    qx = fused_linear(x2d, lp["cross_wq"], lp["cross_bq"], out_dtype=jnp.bfloat16)
    kvm = fused_linear(mem2d, lp["cross_wkv"], lp["cross_bkv"], out_dtype=jnp.bfloat16)
    ctx = attention(kvm.reshape(B, Sm, 2 * D), q=qx.reshape(B, S, D),
                    k_pad=mem_kpad, num_heads=H, causal=False)
    x2d = fused_linear(ctx.reshape(B * S, D), lp["cross_wo"], lp["cross_bo"],
                       residual=x2d, ln=(lp["ln2_g"], lp["ln2_b"]),
                       out_dtype=jnp.float32)

    # --- feed forward (bf16 hidden; second matmul fused with residual + LN) ---
    h = fused_linear(x2d, lp["ff_w1"], lp["ff_b1"], activation="relu",
                     out_dtype=jnp.bfloat16, tn=512)
    x2d = fused_linear(h, lp["ff_w2"], lp["ff_b2"],
                       residual=x2d, ln=(lp["ln3_g"], lp["ln3_b"]),
                       out_dtype=jnp.float32)
    return x2d


def decoder_forward(kparams, tgt, memory, tgt_padding_mask, future_mask,
                    memory_padding_mask, num_heads):
    B, S = tgt.shape
    D = kparams["embedding"].shape[1]
    Sm = memory.shape[1]

    # Embedding gather + positional encoding: plain JAX glue.
    x = kparams["embedding"][tgt] * math.sqrt(D) + kparams["pe"][None, :S, :]

    pad_q = tgt_padding_mask[:, 0, 0, :].astype(jnp.float32)          # (B, S)
    if future_mask is not None:
        # TODO(synk): assumes future_mask is the standard upper-triangular causal
        # mask; it is regenerated in-kernel via broadcasted_iota.
        self_qpad, self_kpad, self_causal = pad_q.reshape(B, S, 1), None, True
    else:
        self_qpad, self_kpad, self_causal = None, pad_q.reshape(B, 1, S), False
    mem_kpad = memory_padding_mask[:, 0, 0, :].astype(jnp.float32).reshape(B, 1, Sm)

    x2d = x.reshape(B * S, D)
    mem2d = memory.reshape(B * Sm, D)
    for lp in kparams["layers"]:
        x2d = decoder_layer(x2d, mem2d, B, S, Sm, self_qpad, self_kpad,
                            self_causal, mem_kpad, lp, num_heads)

    x2d = layernorm(x2d, kparams["ln_f_g"], kparams["ln_f_b"])
    return x2d.reshape(B, S, D)


def prepare_kernel_params(params):
    """Fuse QKV / KV projection weights and pre-cast matmul weights to bf16 once."""
    bf = lambda a: a.astype(jnp.bfloat16)
    kp = {"embedding": params["embedding"], "pe": params["pe"],
          "ln_f_g": params["ln_f_g"], "ln_f_b": params["ln_f_b"], "layers": []}
    for lp in params["layers"]:
        sa, ca, ff = lp["self_attn"], lp["cross_attn"], lp["ff"]
        kp["layers"].append({
            "self_wqkv": bf(jnp.concatenate([sa["wq"], sa["wk"], sa["wv"]], axis=1)),
            "self_bqkv": jnp.concatenate([sa["bq"], sa["bk"], sa["bv"]]),
            "self_wo": bf(sa["wo"]), "self_bo": sa["bo"],
            "cross_wq": bf(ca["wq"]), "cross_bq": ca["bq"],
            "cross_wkv": bf(jnp.concatenate([ca["wk"], ca["wv"]], axis=1)),
            "cross_bkv": jnp.concatenate([ca["bk"], ca["bv"]]),
            "cross_wo": bf(ca["wo"]), "cross_bo": ca["bo"],
            "ff_w1": bf(ff["w1"]), "ff_b1": ff["b1"],
            "ff_w2": bf(ff["w2"]), "ff_b2": ff["b2"],
            "ln1_g": lp["ln1_g"], "ln1_b": lp["ln1_b"],
            "ln2_g": lp["ln2_g"], "ln2_b": lp["ln2_b"],
            "ln3_g": lp["ln3_g"], "ln3_b": lp["ln3_b"],
        })
    return kp


# --------------------------- pure-JAX f32 reference ---------------------------

def combine_mask(tgt_padding_mask, future_mask):
    pad = tgt_padding_mask[:, :, 0, :]          # (B,1,S)
    pad = pad[..., None]                        # (B,1,S,1)  (masks query rows)
    fut = future_mask[None, None, :, :]         # (1,1,S,S)
    return jnp.logical_and(pad, jnp.logical_not(fut))   # (B,1,S,S)


def _ref_mha(q_in, k_in, v_in, mask, p, H):
    B, Sq, D = q_in.shape
    Sk = k_in.shape[1]
    Dh = D // H
    q = (q_in @ p["wq"] + p["bq"]).reshape(B, Sq, H, Dh).transpose(0, 2, 1, 3)
    k = (k_in @ p["wk"] + p["bk"]).reshape(B, Sk, H, Dh).transpose(0, 2, 1, 3)
    v = (v_in @ p["wv"] + p["bv"]).reshape(B, Sk, H, Dh).transpose(0, 2, 1, 3)
    s = jnp.einsum("bhqd,bhkd->bhqk", q, k) / math.sqrt(Dh)
    s = jnp.where(mask, s, -1e30)
    w = jax.nn.softmax(s, axis=-1)
    o = jnp.einsum("bhqk,bhkd->bhqd", w, v)
    o = o.transpose(0, 2, 1, 3).reshape(B, Sq, D)
    return o @ p["wo"] + p["bo"]


def _ref_ln(x, g, b, eps=1e-5):
    m = jnp.mean(x, axis=-1, keepdims=True)
    v = jnp.mean((x - m) ** 2, axis=-1, keepdims=True)
    return (x - m) * jax.lax.rsqrt(v + eps) * g + b


def ref_forward(params, tgt, memory, tgt_padding_mask, future_mask,
                memory_padding_mask, H):
    B, S = tgt.shape
    D = params["embedding"].shape[1]
    comb = combine_mask(tgt_padding_mask, future_mask)
    x = params["embedding"][tgt] * math.sqrt(D) + params["pe"][None, :S, :]
    for p in params["layers"]:
        a = _ref_mha(x, x, x, comb, p["self_attn"], H)
        x = _ref_ln(x + a, p["ln1_g"], p["ln1_b"])
        a = _ref_mha(x, memory, memory, memory_padding_mask, p["cross_attn"], H)
        x = _ref_ln(x + a, p["ln2_g"], p["ln2_b"])
        f = jnp.maximum(x @ p["ff"]["w1"] + p["ff"]["b1"], 0.0) @ p["ff"]["w2"] + p["ff"]["b2"]
        x = _ref_ln(x + f, p["ln3_g"], p["ln3_b"])
    return _ref_ln(x, params["ln_f_g"], params["ln_f_b"])


# ------------------------------- param init -----------------------------------

def init_params(key, vocab, d_model, num_heads, num_layers, d_ff, max_len,
                pad_token_id=0):
    def nrm(k, shape, scale=0.05):
        return jax.random.normal(k, shape, jnp.float32) * scale

    keys = iter(jax.random.split(key, 256))
    emb = nrm(next(keys), (vocab, d_model), 0.1)
    emb = emb.at[pad_token_id].set(0.0)          # padding_idx row is zero

    pos = jnp.arange(max_len, dtype=jnp.float32)[:, None]
    div = jnp.exp(jnp.arange(0, d_model, 2, dtype=jnp.float32)
                  * (-math.log(10000.0) / d_model))
    pe = jnp.zeros((max_len, d_model), jnp.float32)
    pe = pe.at[:, 0::2].set(jnp.sin(pos * div))
    pe = pe.at[:, 1::2].set(jnp.cos(pos * div))

    def attn_params():
        return {
            "wq": nrm(next(keys), (d_model, d_model)), "bq": nrm(next(keys), (d_model,)),
            "wk": nrm(next(keys), (d_model, d_model)), "bk": nrm(next(keys), (d_model,)),
            "wv": nrm(next(keys), (d_model, d_model)), "bv": nrm(next(keys), (d_model,)),
            "wo": nrm(next(keys), (d_model, d_model)), "bo": nrm(next(keys), (d_model,)),
        }

    layers = []
    for _ in range(num_layers):
        layers.append({
            "self_attn": attn_params(),
            "cross_attn": attn_params(),
            "ff": {"w1": nrm(next(keys), (d_model, d_ff)),
                   "b1": nrm(next(keys), (d_ff,)),
                   "w2": nrm(next(keys), (d_ff, d_model)),
                   "b2": nrm(next(keys), (d_model,))},
            "ln1_g": jnp.ones((d_model,)), "ln1_b": jnp.zeros((d_model,)),
            "ln2_g": jnp.ones((d_model,)), "ln2_b": jnp.zeros((d_model,)),
            "ln3_g": jnp.ones((d_model,)), "ln3_b": jnp.zeros((d_model,)),
        })

    return {"embedding": emb, "pe": pe, "layers": layers,
            "ln_f_g": jnp.ones((d_model,)), "ln_f_b": jnp.zeros((d_model,))}


# ----------------------------------- main --------------------------------------

if __name__ == "__main__":
    VOCAB, D_MODEL, HEADS, LAYERS, D_FF, MAX_LEN, PAD = 64, 32, 4, 2, 64, 16, 0
    B, S_TGT, S_SRC = 2, 8, 8

    key = jax.random.PRNGKey(0)
    k_p, k_tgt, k_mem = jax.random.split(key, 3)

    params = init_params(k_p, VOCAB, D_MODEL, HEADS, LAYERS, D_FF, MAX_LEN, PAD)
    kparams = prepare_kernel_params(params)

    tgt = jax.random.randint(k_tgt, (B, S_TGT), 1, VOCAB, dtype=jnp.int32)
    tgt = tgt.at[0, 6:].set(PAD).at[1, 7:].set(PAD)       # some padding
    memory = jax.random.normal(k_mem, (B, S_SRC, D_MODEL), jnp.float32)

    tgt_padding_mask = (tgt != PAD)[:, None, None, :]                      # (B,1,1,S)
    future_mask = jnp.triu(jnp.ones((S_TGT, S_TGT), dtype=bool), k=1)      # True=future
    src_valid = jnp.array([[True] * S_SRC,
                           [True] * (S_SRC - 2) + [False] * 2])
    memory_padding_mask = src_valid[:, None, None, :]                      # (B,1,1,S_src)

    out = decoder_forward(kparams, tgt, memory, tgt_padding_mask, future_mask,
                          memory_padding_mask, HEADS)
    out = jax.block_until_ready(out)

    ref = ref_forward(params, tgt, memory, tgt_padding_mask, future_mask,
                      memory_padding_mask, HEADS)
    assert out.shape == (B, S_TGT, D_MODEL)
    # Tolerance reflects bf16 MXU inputs / bf16 intermediates + approx reciprocal
    # in the softmax (reference is pure f32).
    assert jnp.allclose(out, ref, atol=5e-2, rtol=5e-2), "mismatch vs reference"
    print("KERNEL_OK")
</pallas_src>

<mosaic_0001>
module attributes {stable_mosaic.version = 11 : i64} {
  func.func @_linear_kernel(%arg0: i32, %arg1: i32, %arg2: i32, %arg3: memref<16x32xf32, #tpu.memory_space<vmem>>, %arg4: memref<32x96xbf16, #tpu.memory_space<vmem>>, %arg5: memref<1x96xf32, #tpu.memory_space<vmem>>, %arg6: memref<16x96xbf16, #tpu.memory_space<vmem>>, %arg7: memref<16x96xf32, #tpu.memory_space<vmem>>) attributes {dimension_semantics = [#tpu.dimension_semantics<parallel>, #tpu.dimension_semantics<parallel>, #tpu.dimension_semantics<arbitrary>], iteration_bounds = array<i64: 1, 1, 1>, scalar_prefetch = 0 : i64, scratch_operands = 1 : i64, tpu.core_type = #tpu.core_type<tc>, window_params = [{transform_indices = @transform_0, window_bounds = array<i64: 16, 32>}, {transform_indices = @transform_1, window_bounds = array<i64: 32, 96>}, {transform_indices = @transform_2, window_bounds = array<i64: 1, 96>}, {transform_indices = @transform_3, window_bounds = array<i64: 16, 96>}]} {
    %c0_i32 = arith.constant 0 : i32
    %0 = arith.cmpi eq, %arg2, %c0_i32 : i32
    %1 = arith.extui %0 : i1 to i32
    %c0_i32_0 = arith.constant 0 : i32
    %2 = arith.cmpi ne, %1, %c0_i32_0 : i32
    scf.if %2 {
      %cst_10 = arith.constant 0.000000e+00 : f32
      %13 = vector.broadcast %cst_10 : f32 to vector<16x96xf32>
      %c0_11 = arith.constant 0 : index
      %c0_12 = arith.constant 0 : index
      %14 = vector.load %arg7[%c0_11, %c0_12] : memref<16x96xf32, #tpu.memory_space<vmem>>, vector<16x96xf32>
      tpu.vector_store %arg7[%c0_11, %c0_12], %13 {strides = array<i32>} : memref<16x96xf32, #tpu.memory_space<vmem>>, vector<16x96xf32>,
    } else {
    }
    %c0 = arith.constant 0 : index
    %c0_1 = arith.constant 0 : index
    %3 = vector.load %arg7[%c0, %c0_1] : memref<16x96xf32, #tpu.memory_space<vmem>>, vector<16x96xf32>
    %c0_2 = arith.constant 0 : index
    %c0_3 = arith.constant 0 : index
    %4 = vector.load %arg3[%c0_2, %c0_3] : memref<16x32xf32, #tpu.memory_space<vmem>>, vector<16x32xf32>
    %5 = arith.truncf %4 : vector<16x32xf32> to vector<16x32xbf16>
    %c0_4 = arith.constant 0 : index
    %c0_5 = arith.constant 0 : index
    %6 = vector.load %arg4[%c0_4, %c0_5] : memref<32x96xbf16, #tpu.memory_space<vmem>>, vector<32x96xbf16>
    %cst = arith.constant dense<0.000000e+00> : vector<16x96xf32>
    %7 = tpu.matmul %5, %6, %cst {dimension_numbers = #tpu.dot_dimension_numbers<[1], [0], [0], [1], [0, 0, 1, 1], [], []>} : vector<16x32xbf16>, vector<32x96xbf16>, vector<16x96xf32> -> vector<16x96xf32>
    %8 = arith.addf %3, %7 : vector<16x96xf32>
    %c0_6 = arith.constant 0 : index
    %c0_7 = arith.constant 0 : index
    %9 = vector.load %arg7[%c0_6, %c0_7] : memref<16x96xf32, #tpu.memory_space<vmem>>, vector<16x96xf32>
    tpu.vector_store %arg7[%c0_6, %c0_7], %8 {strides = array<i32>} : memref<16x96xf32, #tpu.memory_space<vmem>>, vector<16x96xf32>,
    %c0_i32_8 = arith.constant 0 : i32
    %10 = arith.cmpi eq, %arg2, %c0_i32_8 : i32
    %11 = arith.extui %10 : i1 to i32
    %c0_i32_9 = arith.constant 0 : i32
    %12 = arith.cmpi ne, %11, %c0_i32_9 : i32
    scf.if %12 {
      %c0_10 = arith.constant 0 : index
      %c0_11 = arith.constant 0 : index
      %13 = vector.load %arg7[%c0_10, %c0_11] : memref<16x96xf32, #tpu.memory_space<vmem>>, vector<16x96xf32>
      %c0_12 = arith.constant 0 : index
      %c0_13 = arith.constant 0 : index
      %14 = vector.load %arg5[%c0_12, %c0_13] : memref<1x96xf32, #tpu.memory_space<vmem>>, vector<1x96xf32>
      %15 = vector.broadcast %14 : vector<1x96xf32> to vector<16x96xf32>
      %16 = arith.addf %13, %15 : vector<16x96xf32>
      %17 = arith.truncf %16 : vector<16x96xf32> to vector<16x96xbf16>
      %c0_14 = arith.constant 0 : index
      %c0_15 = arith.constant 0 : index
      %18 = vector.load %arg6[%c0_14, %c0_15] : memref<16x96xbf16, #tpu.memory_space<vmem>>, vector<16x96xbf16>
      tpu.vector_store %arg6[%c0_14, %c0_15], %17 {strides = array<i32>} : memref<16x96xbf16, #tpu.memory_space<vmem>>, vector<16x96xbf16>,
    } else {
    }
    return
  }
  func.func @transform_0(%arg0: i32, %arg1: i32, %arg2: i32) -> (i32, i32) {
    %c0_i32 = arith.constant 0 : i32
    return %arg0, %arg2 : i32, i32
  }
  func.func @transform_1(%arg0: i32, %arg1: i32, %arg2: i32) -> (i32, i32) {
    %c0_i32 = arith.constant 0 : i32
    return %arg2, %arg1 : i32, i32
  }
  func.func @transform_2(%arg0: i32, %arg1: i32, %arg2: i32) -> (i32, i32) {
    %c0_i32 = arith.constant 0 : i32
    %c0_i32_0 = arith.constant 0 : i32
    return %c0_i32, %arg1 : i32, i32
  }
  func.func @transform_3(%arg0: i32, %arg1: i32, %arg2: i32) -> (i32, i32) {
    %c0_i32 = arith.constant 0 : i32
    return %arg0, %arg1 : i32, i32
  }
}

</mosaic_0001>

<bundles_post_ra>
// kernel: tpu_custom_call.1
= control target key start
LH: loop header
LB: loop body
LE: loop exit
PB: predicated region body
PF: predicated region fallthrough
CT: control target
= control target key end

     0   :  { %8 = vsyncpa [#allocation4], 0  ;;  %s345_s0 = inlined_call_operand.hbm [shape: f32[16,32], index: 0, kind: input, shape index: {}]   ;;  %s346_s1 = inlined_call_operand.hbm [shape: bf16[32,96], index: 1, kind: input, shape index: {}]   ;;  %s347_s2 = inlined_call_operand.vmem [shape: f32[1,96], index: 2, kind: input, shape index: {}]   ;;  %s348_s3 = inlined_call_operand.hbm [shape: bf16[16,96], index: 3, kind: output, shape index: {}]  }
   0x1   :  { %9 = vsyncpa [#allocation7], 0 }
   0x2   :  { %10 = vsyncpa [#allocation5], 0  ;;  %s267_s12 = smov [#allocation3]   ;;  %s195_s16 = scalar_lea.hbm %s345_s0, 256 }
   0x3   :  { %s16_s13 = sshll.u32 %s267_s12, 4  ;;  %p196_p0 = scmp.ne.s32.totalorder %s345_s0, %s195_s16  ;;  %s17_s13 = int_to_ptr.vmem [resolvable:$true] %s16_s13 }
   0x4   :  { %p199_p1 = scmp.lt.u32.totalorder %s195_s16, %s345_s0 }
   0x6   :  { %p201_p2 = pnand %p199_p1, %p196_p0 }
   0x8   :  { %204 = shalt.err (!%p201_p2)
}
   0x9   :  { %s205_s21 = scalar_lea.vmem %s17_s13, 256  ;;  %p210_p4 = scmp.lt.s32.totalorder %s17_s13, %s17_s13 }
   0xa   :  { %p206_p3 = scmp.ne.s32.totalorder %s17_s13, %s205_s21  ;;  %p211_p5 = scmp.lt.s32.totalorder %s205_s21, %s205_s21 }
   0xc   :  { %p212_p6 = por %p211_p5, %p210_p4 }
   0xe   :  { %p213_p7 = pnand %p212_p6, %p206_p3 }
  0x10   :  { %216 = shalt.err (!%p213_p7)
}
  0x11   :  { %s268_s22 = smov 128   ;;  %s269_s23 = smov 8  }
  0x12   :  { %22 = dma.hbm_to_vmem [thread:$0]  %s345_s0, 256, %s17_s13, [#allocation4], %s268_s22, %s268_s22, %s269_s23  }
  0x13   :  { %s270_s26 = smov [#allocation6]   ;;  %s217_s30 = scalar_lea.hbm %s346_s1, 256 }
  0x14   :  { %s28_s27 = sshll.u32 %s270_s26, 4  ;;  %p218_p8 = scmp.ne.s32.totalorder %s346_s1, %s217_s30  ;;  %s29_s27 = int_to_ptr.vmem [resolvable:$true] %s28_s27 }
  0x15   :  { %p221_p9 = scmp.lt.u32.totalorder %s217_s30, %s346_s1 }
  0x17   :  { %p223_p10 = pnand %p221_p9, %p218_p8 }
  0x19   :  { %226 = shalt.err (!%p223_p10)
}
  0x1a   :  { %s227_s8 = scalar_lea.vmem %s29_s27, 256  ;;  %p232_p12 = scmp.lt.s32.totalorder %s29_s27, %s29_s27 }
  0x1b   :  { %p228_p11 = scmp.ne.s32.totalorder %s29_s27, %s227_s8  ;;  %p233_p13 = scmp.lt.s32.totalorder %s227_s8, %s227_s8 }
  0x1d   :  { %p234_p0 = por %p233_p13, %p232_p12 }
  0x1f   :  { %p235_p1 = pnand %p234_p0, %p228_p11 }
  0x21   :  { %238 = shalt.err (!%p235_p1)
}
  0x22   :  { %s271_s0 = smov 64   ;;  %s272_s9 = smov 4  }
  0x23   :  { %34 = dma.hbm_to_vmem [thread:$0]  %s346_s1, 256, %s29_s27, [#allocation7], %s271_s0, %s271_s0, %s272_s9  }
  0x24   :  { %261 = dma.done.wait [#allocation4], 256  }
  0x25   :  { %262 = vsyncadd [#allocation4], 4294967040 }
  0x26   :  { %263 = dma.done.wait [#allocation7], 256  }
  0x27   :  { %264 = vsyncadd [#allocation7], 4294967040  ;;  %vm48_vm0 = vcmask 785408   ;;  %v273_v0 = vmov 0.0   ;;  %vm274_vm1 = vmmov 0   ;;  %v193_v1 = vld [vmem:[#allocation6] sm:$0xff]  }
  0x28   :  { %49 = vst.msk [vmem:[#allocation2] sm:$0xff] %vm48_vm0, %v273_v0  ;;  %50 = vst.msk [vmem:[#allocation2 + $0x8] sm:$0xff] %vm48_vm0, %v273_v0  ;;  %176 = vmatprep.subr.bf16.mxu0 %v273_v0  ;;  %180 = vmatprep.mubr.msk.bf16.mxu0 %vm274_vm1, %v273_v0  ;;  %v194_v2 = vld [vmem:[#allocation6 + $0x8] sm:$0xff]   ;;  %v53_v3 = vld [vmem:[#allocation3] sm:$0xff]  ;;  %vm72_vm2 = vcmask 261120   ;;  %vm144_vm3 = vcmask 781312  }
  0x29   :  { %177 = vmatpush3.bf16.msra.mxu0 %v193_v1  ;;  %v54_v4 = vld [vmem:[#allocation3 + $0x8] sm:$0xff]  ;;  %v168_v14 = vld [vmem:[%s347_s2] ss:$0 sm:$0xff]  ;;  %s275_s13 = smov [#allocation8]  }
  0x2a   :  { %178 = vmatprep.subr.bf16.mxu0 %v273_v0  ;;  %v55_v5 = vpack.c.bf16 %v54_v4, %v53_v3  ;;  %s152_s14 = sshll.u32 %s275_s13, 4  ;;  %s153_s14 = int_to_ptr.vmem [resolvable:$true] %s152_s14 }
  0x2b   :  { %s239_s15 = scalar_lea.vmem %s153_s14, 128  ;;  %p244_p3 = scmp.lt.s32.totalorder %s153_s14, %s153_s14 }
  0x2c   :  { %p240_p2 = scmp.ne.s32.totalorder %s153_s14, %s239_s15  ;;  %p245_p4 = scmp.lt.s32.totalorder %s239_s15, %s239_s15 }
  0x2d   :  { %179 = vmatpush3.bf16.msra.mxu0 %v194_v2 }
  0x2e   :  { %p246_p5 = por %p245_p4, %p244_p3 }
  0x2f   :  { %v51_v6 = vld [vmem:[#allocation2] sm:$0xff]  ;;  %v52_v8 = vld [vmem:[#allocation2 + $0x8] sm:$0xff] }
  0x30   :  { %181 = vmatmul.mubr.msk.bf16.vlgmr.msra.gmra.mrb[0].mxu0 %vm72_vm2, %v55_v5  ;;  %p247_p6 = pnand %p246_p5, %p240_p2 }
 0x103   :  { %v110_v7 = vpop.f32.mrb[0].mxu0 }
 0x104   :  { %v117_v9 = vadd.f32 %v110_v7, %v51_v6  ;;  %v182_v10 = vpop.f32.mrb[1].mxu0 }
 0x105   :  { %v113_v11 = vpop.f32.mrb[2].mxu0 }
 0x106   :  { %120 = vst.msk [vmem:[#allocation2] sm:$0xff] %vm48_vm0, %v117_v9  ;;  %v118_v12 = vadd.f32 %v113_v11, %v52_v8  ;;  %v183_v13 = vpop.f32.mrb[3].mxu0 }
 0x108   :  { %121 = vst.msk [vmem:[#allocation2 + $0x8] sm:$0xff] %vm48_vm0, %v118_v12 }
 0x10d   :  { %v125_v15 = vld [vmem:[#allocation2] sm:$0xff] }
 0x10e   :  { %v134_v16 = vadd.f32 %v168_v14, %v125_v15 }
 0x10f   :  { %v126_v17 = vld [vmem:[#allocation2 + $0x8] sm:$0xff] }
 0x110   :  { %v135_v18 = vadd.f32 %v168_v14, %v126_v17  ;;  %v171_v19 = vpack.c.bf16 %v134_v16, %v134_v16 }
 0x112   :  { %v172_v20 = vpack.c.bf16 %v135_v18, %v135_v18  ;;  %145 = vst.msk [vmem:[#allocation8] sm:$0xf] %vm144_vm3, %v171_v19 }
 0x114   :  { %146 = vst.msk [vmem:[#allocation8 + $0x4] sm:$0xf] %vm144_vm3, %v172_v20 }
 0x115   :  { %250 = shalt.err (!%p247_p6)
}
 0x116   :  { %s251_s17 = scalar_lea.hbm %s348_s3, 128 }
 0x117   :  { %p252_p7 = scmp.ne.s32.totalorder %s348_s3, %s251_s17  ;;  %p255_p8 = scmp.lt.u32.totalorder %s251_s17, %s348_s3 }
 0x119   :  { %p257_p9 = pnand %p255_p8, %p252_p7 }
 0x11b   :  { %260 = shalt.err (!%p257_p9)
}
 0x11c   :  { %158 = dma.vmem_to_hbm [thread:$0]  %s153_s14, 128, %s348_s3, [#allocation5], %s271_s0, %s271_s0, %s272_s9  }
 0x11d   :  { %265 = dma.done.wait [#allocation5], 128  }
 0x11e   :  { %266 = vsyncadd [#allocation5], 4294967168 }
 0x11f   :  { %162 = vsyncpa [#allocation4], 1 }
 0x120   :  { %163 = vsyncpa [#allocation7], 1 }
 0x121   :  { %164 = vsyncpa [#allocation5], 1 }

</bundles_post_ra>
